<compile_context>
chip_gen: v6e
topology: v6e:2x2x1
jax: 0.10.0
libtpu: 0.0.40
codegen_flags: <defaults>
</compile_context>

<pallas_src>
import functools

import jax
import jax.numpy as jnp
from jax import lax
from jax.experimental import pallas as pl
from jax.experimental.pallas import tpu as pltpu

NEG_SLOPE = 0.1
K = 3  # conv kernel size


def _round_up(x, m):
    return (x + m - 1) // m * m


def _leaky(x):
    return jnp.where(x > 0, x, NEG_SLOPE * x)


def _double_conv_kernel(x_ref, mask_ref, w1_ref, b1_ref, w2_ref, b2_ref,
                        o_ref, col1_ref, mid_ref, col2_ref,
                        *, W, HWq, Lq, NB):
    """Fused conv3x3 -> LeakyReLU -> conv3x3 -> LeakyReLU for NB images.

    Layouts (Wp = W+2, HWp = H*Wp, HWq = roundup(HWp, 128), Lq >= 2*Wp+2+HWq):
      x_ref    (NB, cin_p, Lq) bf16  concat([x2, x1u]) spatially padded by 1,
                                     row-major flattened, zero-padded to Lq
      mask_ref (1, NB*HWq)   f32     1 where the lane is a real pixel
      w1_ref   (cmid_p, 9*cin_p) bf16  im2col conv1 weights (tap-major rows)
      b1_ref   (cmid_p, 1)   f32
      w2_ref   (cout, 9*cmid_p) bf16, b2_ref (cout, 1) f32
      o_ref    (NB, cout, HWq) f32   q-layout output (garbage lanes dropped
                                     once by the wrapper)
      col1_ref (9*cin_p,  NB*HWq) bf16  VMEM im2col scratch for conv1
      mid_ref  (cmid_p, NB*Lq)    bf16  conv1 activation re-padded for conv2
      col2_ref (9*cmid_p, NB*HWq) bf16  VMEM im2col scratch for conv2
    """
    Wp = W + 2
    cin = x_ref.shape[1]
    cmid = w1_ref.shape[0]
    cout = w2_ref.shape[0]

    # ---- conv1: im2col (lane-shifted ref slices) + one MXU matmul ----------
    for nb in range(NB):
        for kh in range(K):
            for kw in range(K):
                t = kh * K + kw
                off = kh * Wp + kw
                col1_ref[t * cin:(t + 1) * cin, nb * HWq:(nb + 1) * HWq] = (
                    x_ref[nb, :, off:off + HWq])
    acc1 = jnp.dot(w1_ref[...], col1_ref[...],
                   preferred_element_type=jnp.float32)
    act1 = _leaky(acc1 + b1_ref[...]) * mask_ref[...]   # (cmid_p, NB*HWq) f32

    # ---- stage into a zero-bordered buffer: masked garbage lanes land
    # exactly on the SAME-pad border cells of conv2's input. Only the two
    # small border strips are re-zeroed; the interior is fully overwritten.
    act1_b = act1.astype(mid_ref.dtype)
    for nb in range(NB):
        s = nb * Lq
        mid_ref[:, s:s + Wp + 1] = jnp.zeros((cmid, Wp + 1), mid_ref.dtype)
        mid_ref[:, s + Wp + 1 + HWq:s + Lq] = jnp.zeros(
            (cmid, Lq - (Wp + 1 + HWq)), mid_ref.dtype)
        mid_ref[:, s + Wp + 1:s + Wp + 1 + HWq] = (
            act1_b[:, nb * HWq:(nb + 1) * HWq])

    # ---- conv2: im2col + one MXU matmul ------------------------------------
    for nb in range(NB):
        for kh in range(K):
            for kw in range(K):
                t = kh * K + kw
                off = nb * Lq + kh * Wp + kw
                col2_ref[t * cmid:(t + 1) * cmid, nb * HWq:(nb + 1) * HWq] = (
                    mid_ref[:, off:off + HWq])
    acc2 = jnp.dot(w2_ref[...], col2_ref[...],
                   preferred_element_type=jnp.float32)
    out = _leaky(acc2 + b2_ref[...])                      # (cout, NB*HWq) f32
    for nb in range(NB):
        o_ref[nb] = out[:, nb * HWq:(nb + 1) * HWq].astype(o_ref.dtype)


def up_double_conv_pallas(x2, x1u, w1, b1, w2, b2, *, batch_block=None):
    """x2: (N,c2,H,W) skip; x1u: (N,c1,h1,w1) upsampled x1 (h1<=H, w1<=W; the
    diff-pad is folded into the halo pad here). Conv weights in PyTorch OIHW
    layout. Returns (N, cout, H, W) f32."""
    N, c2, H, W = x2.shape
    c1 = x1u.shape[1]
    cin = c1 + c2
    cmid = w1.shape[0]
    cout = w2.shape[0]
    assert w1.shape[1] == cin, (w1.shape, cin)
    assert w2.shape[1] == cmid, (w2.shape, cmid)

    Wp = W + 2
    HWp = H * Wp
    HWq = _round_up(HWp, 128)               # lane-dense q-domain width
    Lq = _round_up(2 * Wp + 2 + HWq, 128)   # padded-flat image length
    cin_p = _round_up(cin, 8)               # sublane-aligned im2col rows
    cmid_p = _round_up(cmid, 8)

    # Batch blocking: fold images into the lane axis per step, but keep >= 2
    # "parallel" grid steps when the batch allows (v7x has 2 TensorCores).
    if batch_block is None:
        nb_lanes = max(1, 2048 // HWq)      # target a few kilo-lanes / step
        nb_cores = max(1, N // 2)
        batch_block = max(1, min(N, nb_lanes, nb_cores))
    NB = batch_block
    Npad = _round_up(N, NB)

    # ---- host-side prep: one pad per input, concat, flatten, bf16 ----------
    diffY = H - x1u.shape[2]
    diffX = W - x1u.shape[3]
    x2p = jnp.pad(x2.astype(jnp.bfloat16), ((0, 0), (0, 0), (1, 1), (1, 1)))
    x1p = jnp.pad(x1u.astype(jnp.bfloat16),
                  ((0, 0), (0, 0),
                   (diffY // 2 + 1, diffY - diffY // 2 + 1),
                   (diffX // 2 + 1, diffX - diffX // 2 + 1)))
    xcat = jnp.concatenate([x2p, x1p], axis=1)          # (N, cin, H+2, Wp)
    if cin_p != cin:
        xcat = jnp.pad(xcat, ((0, 0), (0, cin_p - cin), (0, 0), (0, 0)))
    xflat = xcat.reshape(N, cin_p, (H + 2) * Wp)
    xflat = jnp.pad(xflat, ((0, Npad - N), (0, 0), (0, Lq - (H + 2) * Wp)))

    # q-layout lane-validity mask (tiny, computed on host).
    lane = jnp.arange(NB * HWq, dtype=jnp.int32) % HWq
    mask = ((lane < HWp) & (lane % Wp < W)).astype(jnp.float32)
    mask = mask.reshape(1, NB * HWq)

    # OIHW -> (O, 9*I_padded) im2col weight matrices (tap-major rows), bf16.
    w1t = jnp.transpose(w1.astype(jnp.bfloat16), (0, 2, 3, 1))      # (O,kh,kw,I)
    w1t = jnp.pad(w1t, ((0, cmid_p - cmid), (0, 0), (0, 0), (0, cin_p - cin)))
    w1m = w1t.reshape(cmid_p, K * K * cin_p)
    w2t = jnp.transpose(w2.astype(jnp.bfloat16), (0, 2, 3, 1))
    w2t = jnp.pad(w2t, ((0, 0), (0, 0), (0, 0), (0, cmid_p - cmid)))
    w2m = w2t.reshape(cout, K * K * cmid_p)
    b1c = jnp.pad(b1.astype(jnp.float32), (0, cmid_p - cmid)).reshape(cmid_p, 1)
    b2c = b2.astype(jnp.float32).reshape(cout, 1)

    kernel = functools.partial(_double_conv_kernel, W=W, HWq=HWq, Lq=Lq, NB=NB)
    out_q = pl.pallas_call(
        kernel,
        out_shape=jax.ShapeDtypeStruct((Npad, cout, HWq), jnp.float32),
        grid_spec=pltpu.PrefetchScalarGridSpec(
            num_scalar_prefetch=0,
            grid=(Npad // NB,),
            in_specs=[
                pl.BlockSpec((NB, cin_p, Lq), lambda g: (g, 0, 0)),
                pl.BlockSpec((1, NB * HWq), lambda g: (0, 0)),
                pl.BlockSpec((cmid_p, K * K * cin_p), lambda g: (0, 0)),
                pl.BlockSpec((cmid_p, 1), lambda g: (0, 0)),
                pl.BlockSpec((cout, K * K * cmid_p), lambda g: (0, 0)),
                pl.BlockSpec((cout, 1), lambda g: (0, 0)),
            ],
            out_specs=pl.BlockSpec((NB, cout, HWq), lambda g: (g, 0, 0)),
            scratch_shapes=[
                pltpu.VMEM((K * K * cin_p, NB * HWq), jnp.bfloat16),
                pltpu.VMEM((cmid_p, NB * Lq), jnp.bfloat16),
                pltpu.VMEM((K * K * cmid_p, NB * HWq), jnp.bfloat16),
            ],
        ),
        compiler_params=pltpu.CompilerParams(
            dimension_semantics=("parallel",)),
    )(xflat, mask, w1m, b1c, w2m, b2c)

    # q-layout (lane-padded) -> NCHW: drop the garbage lanes once.
    return out_q[:N, :, :HWp].reshape(N, cout, H, Wp)[:, :, :, :W]


def _interp_matrix_1d(n_in, n_out, dtype=jnp.float32):
    """(n_out, n_in) align_corners=True linear interpolation matrix."""
    if n_out == 1:
        return jnp.zeros((1, n_in), dtype).at[0, 0].set(1.0)
    src = jnp.arange(n_out, dtype=jnp.float32) * (n_in - 1) / (n_out - 1)
    i0 = jnp.floor(src).astype(jnp.int32)
    i1 = jnp.minimum(i0 + 1, n_in - 1)
    f = src - i0.astype(jnp.float32)
    r = jnp.arange(n_out)
    m = jnp.zeros((n_out, n_in), dtype)
    m = m.at[r, i0].add((1.0 - f).astype(dtype))
    m = m.at[r, i1].add(f.astype(dtype))
    return m


def bilinear_upsample_2x_align_corners(x):
    """(N,C,H,W) -> (N,C,2H,2W); matches nn.Upsample(scale_factor=2,
    mode='bilinear', align_corners=True). Separable -> two small matmuls."""
    _, _, H, W = x.shape
    ah = _interp_matrix_1d(H, 2 * H)
    aw = _interp_matrix_1d(W, 2 * W)
    return jnp.einsum("oh,nchw,pw->ncop", ah, x, aw,
                      precision=lax.Precision.HIGHEST)


def up_forward(params, x1, x2):
    """Pallas implementation of `up.forward(x1, x2)`. x1/x2: NCHW f32."""
    w1, b1, w2, b2 = params  # PyTorch OIHW conv layout
    x1u = bilinear_upsample_2x_align_corners(x1)
    # diff-pad is folded into the SAME-halo pad inside the conv wrapper.
    return up_double_conv_pallas(x2, x1u, w1, b1, w2, b2)


def up_forward_ref(params, x1, x2):
    """Pure-JAX (XLA conv, f32) reference with identical semantics."""
    w1, b1, w2, b2 = params
    x1u = bilinear_upsample_2x_align_corners(x1)
    diffY = x2.shape[2] - x1u.shape[2]
    diffX = x2.shape[3] - x1u.shape[3]
    x1u = jnp.pad(x1u, ((0, 0), (0, 0),
                        (diffY // 2, diffY - diffY // 2),
                        (diffX // 2, diffX - diffX // 2)))
    x = jnp.concatenate([x2, x1u], axis=1)

    def conv(z, w, b):
        y = lax.conv_general_dilated(
            z, w, window_strides=(1, 1), padding="SAME",
            dimension_numbers=("NCHW", "OIHW", "NCHW"),
            precision=lax.Precision.HIGHEST)
        return y + b[None, :, None, None]

    return _leaky(conv(_leaky(conv(x, w1, b1)), w2, b2))


if __name__ == "__main__":
    key = jax.random.PRNGKey(0)
    kx1, kx2, kw1, kb1, kw2, kb2 = jax.random.split(key, 6)

    # up(in_ch=8, out_ch=4): x1 is the low-res feature map, x2 the skip.
    in_ch, out_ch = 8, 4
    c1 = 4                  # channels of x1 (gets upsampled 2x)
    c2 = in_ch - c1         # channels of x2 (skip)
    N, H, W = 2, 16, 16

    x1 = jax.random.normal(kx1, (N, c1, H // 2, W // 2), jnp.float32)
    x2 = jax.random.normal(kx2, (N, c2, H, W), jnp.float32)

    # Deterministic synthetic parameters (PyTorch OIHW conv layout).
    w1 = jax.random.normal(kw1, (out_ch, in_ch, K, K), jnp.float32) * 0.1
    b1 = jax.random.normal(kb1, (out_ch,), jnp.float32) * 0.1
    w2 = jax.random.normal(kw2, (out_ch, out_ch, K, K), jnp.float32) * 0.1
    b2 = jax.random.normal(kb2, (out_ch,), jnp.float32) * 0.1
    params = (w1, b1, w2, b2)

    out = jax.block_until_ready(up_forward(params, x1, x2))
    ref = jax.block_until_ready(up_forward_ref(params, x1, x2))

    assert out.shape == (N, out_ch, H, W), out.shape
    # bf16 inputs/weights with f32 accumulation -> widened tolerance vs the
    # all-f32 XLA reference.
    if not jnp.allclose(out, ref, atol=3e-2, rtol=3e-2):
        raise RuntimeError(
            "mismatch vs reference: max abs diff = %g"
            % float(jnp.max(jnp.abs(out - ref))))
    print("KERNEL_OK")
</pallas_src>

<mosaic_0001>
module attributes {stable_mosaic.version = 11 : i64} {
  func.func @_double_conv_kernel(%arg0: i32, %arg1: memref<1x8x512xbf16, #tpu.memory_space<vmem>>, %arg2: memref<1x384xf32, #tpu.memory_space<vmem>>, %arg3: memref<8x72xbf16, #tpu.memory_space<vmem>>, %arg4: memref<8x1xf32, #tpu.memory_space<vmem>>, %arg5: memref<4x72xbf16, #tpu.memory_space<vmem>>, %arg6: memref<4x1xf32, #tpu.memory_space<vmem>>, %arg7: memref<1x4x384xf32, #tpu.memory_space<vmem>>, %arg8: memref<72x384xbf16, #tpu.memory_space<vmem>>, %arg9: memref<8x512xbf16, #tpu.memory_space<vmem>>, %arg10: memref<72x384xbf16, #tpu.memory_space<vmem>>) attributes {dimension_semantics = [#tpu.dimension_semantics<parallel>], iteration_bounds = array<i64: 2>, scalar_prefetch = 0 : i64, scratch_operands = 3 : i64, tpu.core_type = #tpu.core_type<tc>, window_params = [{transform_indices = @transform_0, window_bounds = array<i64: 1, 8, 512>}, {pipeline_mode = #tpu.pipeline_mode<synchronous>, transform_indices = @transform_1, window_bounds = array<i64: 1, 384>}, {pipeline_mode = #tpu.pipeline_mode<synchronous>, transform_indices = @transform_2, window_bounds = array<i64: 8, 72>}, {pipeline_mode = #tpu.pipeline_mode<synchronous>, transform_indices = @transform_3, window_bounds = array<i64: 8, 1>}, {pipeline_mode = #tpu.pipeline_mode<synchronous>, transform_indices = @transform_4, window_bounds = array<i64: 4, 72>}, {pipeline_mode = #tpu.pipeline_mode<synchronous>, transform_indices = @transform_5, window_bounds = array<i64: 4, 1>}, {transform_indices = @transform_6, window_bounds = array<i64: 1, 4, 384>}]} {
    %c0 = arith.constant 0 : index
    %c0_0 = arith.constant 0 : index
    %c0_1 = arith.constant 0 : index
    %0 = vector.load %arg1[%c0, %c0_0, %c0_1] : memref<1x8x512xbf16, #tpu.memory_space<vmem>>, vector<1x8x384xbf16>
    %1 = vector.shape_cast %0 : vector<1x8x384xbf16> to vector<8x384xbf16>
    %c0_2 = arith.constant 0 : index
    %c0_3 = arith.constant 0 : index
    %2 = vector.load %arg8[%c0_2, %c0_3] : memref<72x384xbf16, #tpu.memory_space<vmem>>, vector<8x384xbf16>
    tpu.vector_store %arg8[%c0_2, %c0_3], %1 {strides = array<i32>} : memref<72x384xbf16, #tpu.memory_space<vmem>>, vector<8x384xbf16>,
    %c0_4 = arith.constant 0 : index
    %c0_5 = arith.constant 0 : index
    %c1 = arith.constant 1 : index
    %3 = vector.load %arg1[%c0_4, %c0_5, %c1] : memref<1x8x512xbf16, #tpu.memory_space<vmem>>, vector<1x8x384xbf16>
    %4 = vector.shape_cast %3 : vector<1x8x384xbf16> to vector<8x384xbf16>
    %c8 = arith.constant 8 : index
    %c0_6 = arith.constant 0 : index
    %5 = vector.load %arg8[%c8, %c0_6] : memref<72x384xbf16, #tpu.memory_space<vmem>>, vector<8x384xbf16>
    tpu.vector_store %arg8[%c8, %c0_6], %4 {strides = array<i32>} : memref<72x384xbf16, #tpu.memory_space<vmem>>, vector<8x384xbf16>,
    %c0_7 = arith.constant 0 : index
    %c0_8 = arith.constant 0 : index
    %c2 = arith.constant 2 : index
    %6 = vector.load %arg1[%c0_7, %c0_8, %c2] : memref<1x8x512xbf16, #tpu.memory_space<vmem>>, vector<1x8x384xbf16>
    %7 = vector.shape_cast %6 : vector<1x8x384xbf16> to vector<8x384xbf16>
    %c16 = arith.constant 16 : index
    %c0_9 = arith.constant 0 : index
    %8 = vector.load %arg8[%c16, %c0_9] : memref<72x384xbf16, #tpu.memory_space<vmem>>, vector<8x384xbf16>
    tpu.vector_store %arg8[%c16, %c0_9], %7 {strides = array<i32>} : memref<72x384xbf16, #tpu.memory_space<vmem>>, vector<8x384xbf16>,
    %c0_10 = arith.constant 0 : index
    %c0_11 = arith.constant 0 : index
    %c18 = arith.constant 18 : index
    %9 = vector.load %arg1[%c0_10, %c0_11, %c18] : memref<1x8x512xbf16, #tpu.memory_space<vmem>>, vector<1x8x384xbf16>
    %10 = vector.shape_cast %9 : vector<1x8x384xbf16> to vector<8x384xbf16>
    %c24 = arith.constant 24 : index
    %c0_12 = arith.constant 0 : index
    %11 = vector.load %arg8[%c24, %c0_12] : memref<72x384xbf16, #tpu.memory_space<vmem>>, vector<8x384xbf16>
    tpu.vector_store %arg8[%c24, %c0_12], %10 {strides = array<i32>} : memref<72x384xbf16, #tpu.memory_space<vmem>>, vector<8x384xbf16>,
    %c0_13 = arith.constant 0 : index
    %c0_14 = arith.constant 0 : index
    %c19 = arith.constant 19 : index
    %12 = vector.load %arg1[%c0_13, %c0_14, %c19] : memref<1x8x512xbf16, #tpu.memory_space<vmem>>, vector<1x8x384xbf16>
    %13 = vector.shape_cast %12 : vector<1x8x384xbf16> to vector<8x384xbf16>
    %c32 = arith.constant 32 : index
    %c0_15 = arith.constant 0 : index
    %14 = vector.load %arg8[%c32, %c0_15] : memref<72x384xbf16, #tpu.memory_space<vmem>>, vector<8x384xbf16>
    tpu.vector_store %arg8[%c32, %c0_15], %13 {strides = array<i32>} : memref<72x384xbf16, #tpu.memory_space<vmem>>, vector<8x384xbf16>,
    %c0_16 = arith.constant 0 : index
    %c0_17 = arith.constant 0 : index
    %c20 = arith.constant 20 : index
    %15 = vector.load %arg1[%c0_16, %c0_17, %c20] : memref<1x8x512xbf16, #tpu.memory_space<vmem>>, vector<1x8x384xbf16>
    %16 = vector.shape_cast %15 : vector<1x8x384xbf16> to vector<8x384xbf16>
    %c40 = arith.constant 40 : index
    %c0_18 = arith.constant 0 : index
    %17 = vector.load %arg8[%c40, %c0_18] : memref<72x384xbf16, #tpu.memory_space<vmem>>, vector<8x384xbf16>
    tpu.vector_store %arg8[%c40, %c0_18], %16 {strides = array<i32>} : memref<72x384xbf16, #tpu.memory_space<vmem>>, vector<8x384xbf16>,
    %c0_19 = arith.constant 0 : index
    %c0_20 = arith.constant 0 : index
    %c36 = arith.constant 36 : index
    %18 = vector.load %arg1[%c0_19, %c0_20, %c36] : memref<1x8x512xbf16, #tpu.memory_space<vmem>>, vector<1x8x384xbf16>
    %19 = vector.shape_cast %18 : vector<1x8x384xbf16> to vector<8x384xbf16>
    %c48 = arith.constant 48 : index
    %c0_21 = arith.constant 0 : index
    %20 = vector.load %arg8[%c48, %c0_21] : memref<72x384xbf16, #tpu.memory_space<vmem>>, vector<8x384xbf16>
    tpu.vector_store %arg8[%c48, %c0_21], %19 {strides = array<i32>} : memref<72x384xbf16, #tpu.memory_space<vmem>>, vector<8x384xbf16>,
    %c0_22 = arith.constant 0 : index
    %c0_23 = arith.constant 0 : index
    %c37 = arith.constant 37 : index
    %21 = vector.load %arg1[%c0_22, %c0_23, %c37] : memref<1x8x512xbf16, #tpu.memory_space<vmem>>, vector<1x8x384xbf16>
    %22 = vector.shape_cast %21 : vector<1x8x384xbf16> to vector<8x384xbf16>
    %c56 = arith.constant 56 : index
    %c0_24 = arith.constant 0 : index
    %23 = vector.load %arg8[%c56, %c0_24] : memref<72x384xbf16, #tpu.memory_space<vmem>>, vector<8x384xbf16>
    tpu.vector_store %arg8[%c56, %c0_24], %22 {strides = array<i32>} : memref<72x384xbf16, #tpu.memory_space<vmem>>, vector<8x384xbf16>,
    %c0_25 = arith.constant 0 : index
    %c0_26 = arith.constant 0 : index
    %c38 = arith.constant 38 : index
    %24 = vector.load %arg1[%c0_25, %c0_26, %c38] : memref<1x8x512xbf16, #tpu.memory_space<vmem>>, vector<1x8x384xbf16>
    %25 = vector.shape_cast %24 : vector<1x8x384xbf16> to vector<8x384xbf16>
    %c64 = arith.constant 64 : index
    %c0_27 = arith.constant 0 : index
    %26 = vector.load %arg8[%c64, %c0_27] : memref<72x384xbf16, #tpu.memory_space<vmem>>, vector<8x384xbf16>
    tpu.vector_store %arg8[%c64, %c0_27], %25 {strides = array<i32>} : memref<72x384xbf16, #tpu.memory_space<vmem>>, vector<8x384xbf16>,
    %c0_28 = arith.constant 0 : index
    %c0_29 = arith.constant 0 : index
    %27 = vector.load %arg3[%c0_28, %c0_29] : memref<8x72xbf16, #tpu.memory_space<vmem>>, vector<8x72xbf16>
    %c0_30 = arith.constant 0 : index
    %c0_31 = arith.constant 0 : index
    %28 = vector.load %arg8[%c0_30, %c0_31] : memref<72x384xbf16, #tpu.memory_space<vmem>>, vector<72x384xbf16>
    %cst = arith.constant dense<0.000000e+00> : vector<8x384xf32>
    %29 = tpu.matmul %27, %28, %cst {dimension_numbers = #tpu.dot_dimension_numbers<[1], [0], [0], [1], [0, 0, 1, 1], [], []>} : vector<8x72xbf16>, vector<72x384xbf16>, vector<8x384xf32> -> vector<8x384xf32>
    %c0_32 = arith.constant 0 : index
    %c0_33 = arith.constant 0 : index
    %30 = vector.load %arg4[%c0_32, %c0_33] : memref<8x1xf32, #tpu.memory_space<vmem>>, vector<8x1xf32>
    %31 = vector.broadcast %30 : vector<8x1xf32> to vector<8x384xf32>
    %32 = arith.addf %29, %31 : vector<8x384xf32>
    %cst_34 = arith.constant 0.000000e+00 : f32
    %33 = vector.broadcast %cst_34 : f32 to vector<8x384xf32>
    %34 = arith.cmpf ogt, %32, %33 : vector<8x384xf32>
    %cst_35 = arith.constant 1.000000e-01 : f32
    %35 = vector.broadcast %cst_35 : f32 to vector<8x384xf32>
    %36 = arith.mulf %35, %32 : vector<8x384xf32>
    %37 = arith.select %34, %32, %36 : vector<8x384xi1>, vector<8x384xf32>
    %c0_36 = arith.constant 0 : index
    %c0_37 = arith.constant 0 : index
    %38 = vector.load %arg2[%c0_36, %c0_37] : memref<1x384xf32, #tpu.memory_space<vmem>>, vector<1x384xf32>
    %39 = vector.broadcast %38 : vector<1x384xf32> to vector<8x384xf32>
    %40 = arith.mulf %37, %39 : vector<8x384xf32>
    %41 = arith.truncf %40 : vector<8x384xf32> to vector<8x384xbf16>
    %cst_38 = arith.constant 0.000000e+00 : bf16
    %42 = vector.broadcast %cst_38 : bf16 to vector<8x19xbf16>
    %c0_39 = arith.constant 0 : index
    %c0_40 = arith.constant 0 : index
    %43 = vector.load %arg9[%c0_39, %c0_40] : memref<8x512xbf16, #tpu.memory_space<vmem>>, vector<8x19xbf16>
    tpu.vector_store %arg9[%c0_39, %c0_40], %42 {strides = array<i32>} : memref<8x512xbf16, #tpu.memory_space<vmem>>, vector<8x19xbf16>,
    %cst_41 = arith.constant 0.000000e+00 : bf16
    %44 = vector.broadcast %cst_41 : bf16 to vector<8x109xbf16>
    %c0_42 = arith.constant 0 : index
    %c403 = arith.constant 403 : index
    %45 = vector.load %arg9[%c0_42, %c403] : memref<8x512xbf16, #tpu.memory_space<vmem>>, vector<8x109xbf16>
    tpu.vector_store %arg9[%c0_42, %c403], %44 {strides = array<i32>} : memref<8x512xbf16, #tpu.memory_space<vmem>>, vector<8x109xbf16>,
    %c0_43 = arith.constant 0 : index
    %c19_44 = arith.constant 19 : index
    %46 = vector.load %arg9[%c0_43, %c19_44] : memref<8x512xbf16, #tpu.memory_space<vmem>>, vector<8x384xbf16>
    tpu.vector_store %arg9[%c0_43, %c19_44], %41 {strides = array<i32>} : memref<8x512xbf16, #tpu.memory_space<vmem>>, vector<8x384xbf16>,
    %c0_45 = arith.constant 0 : index
    %c0_46 = arith.constant 0 : index
    %47 = vector.load %arg9[%c0_45, %c0_46] : memref<8x512xbf16, #tpu.memory_space<vmem>>, vector<8x384xbf16>
    %c0_47 = arith.constant 0 : index
    %c0_48 = arith.constant 0 : index
    %48 = vector.load %arg10[%c0_47, %c0_48] : memref<72x384xbf16, #tpu.memory_space<vmem>>, vector<8x384xbf16>
    tpu.vector_store %arg10[%c0_47, %c0_48], %47 {strides = array<i32>} : memref<72x384xbf16, #tpu.memory_space<vmem>>, vector<8x384xbf16>,
    %c0_49 = arith.constant 0 : index
    %c1_50 = arith.constant 1 : index
    %49 = vector.load %arg9[%c0_49, %c1_50] : memref<8x512xbf16, #tpu.memory_space<vmem>>, vector<8x384xbf16>
    %c8_51 = arith.constant 8 : index
    %c0_52 = arith.constant 0 : index
    %50 = vector.load %arg10[%c8_51, %c0_52] : memref<72x384xbf16, #tpu.memory_space<vmem>>, vector<8x384xbf16>
    tpu.vector_store %arg10[%c8_51, %c0_52], %49 {strides = array<i32>} : memref<72x384xbf16, #tpu.memory_space<vmem>>, vector<8x384xbf16>,
    %c0_53 = arith.constant 0 : index
    %c2_54 = arith.constant 2 : index
    %51 = vector.load %arg9[%c0_53, %c2_54] : memref<8x512xbf16, #tpu.memory_space<vmem>>, vector<8x384xbf16>
    %c16_55 = arith.constant 16 : index
    %c0_56 = arith.constant 0 : index
    %52 = vector.load %arg10[%c16_55, %c0_56] : memref<72x384xbf16, #tpu.memory_space<vmem>>, vector<8x384xbf16>
    tpu.vector_store %arg10[%c16_55, %c0_56], %51 {strides = array<i32>} : memref<72x384xbf16, #tpu.memory_space<vmem>>, vector<8x384xbf16>,
    %c0_57 = arith.constant 0 : index
    %c18_58 = arith.constant 18 : index
    %53 = vector.load %arg9[%c0_57, %c18_58] : memref<8x512xbf16, #tpu.memory_space<vmem>>, vector<8x384xbf16>
    %c24_59 = arith.constant 24 : index
    %c0_60 = arith.constant 0 : index
    %54 = vector.load %arg10[%c24_59, %c0_60] : memref<72x384xbf16, #tpu.memory_space<vmem>>, vector<8x384xbf16>
    tpu.vector_store %arg10[%c24_59, %c0_60], %53 {strides = array<i32>} : memref<72x384xbf16, #tpu.memory_space<vmem>>, vector<8x384xbf16>,
    %c0_61 = arith.constant 0 : index
    %c19_62 = arith.constant 19 : index
    %55 = vector.load %arg9[%c0_61, %c19_62] : memref<8x512xbf16, #tpu.memory_space<vmem>>, vector<8x384xbf16>
    %c32_63 = arith.constant 32 : index
    %c0_64 = arith.constant 0 : index
    %56 = vector.load %arg10[%c32_63, %c0_64] : memref<72x384xbf16, #tpu.memory_space<vmem>>, vector<8x384xbf16>
    tpu.vector_store %arg10[%c32_63, %c0_64], %55 {strides = array<i32>} : memref<72x384xbf16, #tpu.memory_space<vmem>>, vector<8x384xbf16>,
    %c0_65 = arith.constant 0 : index
    %c20_66 = arith.constant 20 : index
    %57 = vector.load %arg9[%c0_65, %c20_66] : memref<8x512xbf16, #tpu.memory_space<vmem>>, vector<8x384xbf16>
    %c40_67 = arith.constant 40 : index
    %c0_68 = arith.constant 0 : index
    %58 = vector.load %arg10[%c40_67, %c0_68] : memref<72x384xbf16, #tpu.memory_space<vmem>>, vector<8x384xbf16>
    tpu.vector_store %arg10[%c40_67, %c0_68], %57 {strides = array<i32>} : memref<72x384xbf16, #tpu.memory_space<vmem>>, vector<8x384xbf16>,
    %c0_69 = arith.constant 0 : index
    %c36_70 = arith.constant 36 : index
    %59 = vector.load %arg9[%c0_69, %c36_70] : memref<8x512xbf16, #tpu.memory_space<vmem>>, vector<8x384xbf16>
    %c48_71 = arith.constant 48 : index
    %c0_72 = arith.constant 0 : index
    %60 = vector.load %arg10[%c48_71, %c0_72] : memref<72x384xbf16, #tpu.memory_space<vmem>>, vector<8x384xbf16>
    tpu.vector_store %arg10[%c48_71, %c0_72], %59 {strides = array<i32>} : memref<72x384xbf16, #tpu.memory_space<vmem>>, vector<8x384xbf16>,
    %c0_73 = arith.constant 0 : index
    %c37_74 = arith.constant 37 : index
    %61 = vector.load %arg9[%c0_73, %c37_74] : memref<8x512xbf16, #tpu.memory_space<vmem>>, vector<8x384xbf16>
    %c56_75 = arith.constant 56 : index
    %c0_76 = arith.constant 0 : index
    %62 = vector.load %arg10[%c56_75, %c0_76] : memref<72x384xbf16, #tpu.memory_space<vmem>>, vector<8x384xbf16>
    tpu.vector_store %arg10[%c56_75, %c0_76], %61 {strides = array<i32>} : memref<72x384xbf16, #tpu.memory_space<vmem>>, vector<8x384xbf16>,
    %c0_77 = arith.constant 0 : index
    %c38_78 = arith.constant 38 : index
    %63 = vector.load %arg9[%c0_77, %c38_78] : memref<8x512xbf16, #tpu.memory_space<vmem>>, vector<8x384xbf16>
    %c64_79 = arith.constant 64 : index
    %c0_80 = arith.constant 0 : index
    %64 = vector.load %arg10[%c64_79, %c0_80] : memref<72x384xbf16, #tpu.memory_space<vmem>>, vector<8x384xbf16>
    tpu.vector_store %arg10[%c64_79, %c0_80], %63 {strides = array<i32>} : memref<72x384xbf16, #tpu.memory_space<vmem>>, vector<8x384xbf16>,
    %c0_81 = arith.constant 0 : index
    %c0_82 = arith.constant 0 : index
    %65 = vector.load %arg5[%c0_81, %c0_82] : memref<4x72xbf16, #tpu.memory_space<vmem>>, vector<4x72xbf16>
    %c0_83 = arith.constant 0 : index
    %c0_84 = arith.constant 0 : index
    %66 = vector.load %arg10[%c0_83, %c0_84] : memref<72x384xbf16, #tpu.memory_space<vmem>>, vector<72x384xbf16>
    %cst_85 = arith.constant dense<0.000000e+00> : vector<4x384xf32>
    %67 = tpu.matmul %65, %66, %cst_85 {dimension_numbers = #tpu.dot_dimension_numbers<[1], [0], [0], [1], [0, 0, 1, 1], [], []>} : vector<4x72xbf16>, vector<72x384xbf16>, vector<4x384xf32> -> vector<4x384xf32>
    %c0_86 = arith.constant 0 : index
    %c0_87 = arith.constant 0 : index
    %68 = vector.load %arg6[%c0_86, %c0_87] : memref<4x1xf32, #tpu.memory_space<vmem>>, vector<4x1xf32>
    %69 = vector.broadcast %68 : vector<4x1xf32> to vector<4x384xf32>
    %70 = arith.addf %67, %69 : vector<4x384xf32>
    %cst_88 = arith.constant 0.000000e+00 : f32
    %71 = vector.broadcast %cst_88 : f32 to vector<4x384xf32>
    %72 = arith.cmpf ogt, %70, %71 : vector<4x384xf32>
    %cst_89 = arith.constant 1.000000e-01 : f32
    %73 = vector.broadcast %cst_89 : f32 to vector<4x384xf32>
    %74 = arith.mulf %73, %70 : vector<4x384xf32>
    %75 = arith.select %72, %70, %74 : vector<4x384xi1>, vector<4x384xf32>
    %c0_90 = arith.constant 0 : index
    %c0_91 = arith.constant 0 : index
    %c0_92 = arith.constant 0 : index
    %76 = vector.load %arg7[%c0_90, %c0_91, %c0_92] : memref<1x4x384xf32, #tpu.memory_space<vmem>>, vector<1x4x384xf32>
    %77 = vector.shape_cast %76 : vector<1x4x384xf32> to vector<4x384xf32>
    %78 = vector.shape_cast %75 : vector<4x384xf32> to vector<1x4x384xf32>
    tpu.vector_store %arg7[%c0_90, %c0_91, %c0_92], %78 {strides = array<i32>} : memref<1x4x384xf32, #tpu.memory_space<vmem>>, vector<1x4x384xf32>,
    return
  }
  func.func @transform_0(%arg0: i32) -> (i32, i32, i32) {
    %c0_i32 = arith.constant 0 : i32
    %c0_i32_0 = arith.constant 0 : i32
    %c0_i32_1 = arith.constant 0 : i32
    return %arg0, %c0_i32, %c0_i32_0 : i32, i32, i32
  }
  func.func @transform_1(%arg0: i32) -> (i32, i32) {
    %c0_i32 = arith.constant 0 : i32
    %c0_i32_0 = arith.constant 0 : i32
    %c0_i32_1 = arith.constant 0 : i32
    return %c0_i32, %c0_i32_0 : i32, i32
  }
  func.func @transform_2(%arg0: i32) -> (i32, i32) {
    %c0_i32 = arith.constant 0 : i32
    %c0_i32_0 = arith.constant 0 : i32
    %c0_i32_1 = arith.constant 0 : i32
    return %c0_i32, %c0_i32_0 : i32, i32
  }
  func.func @transform_3(%arg0: i32) -> (i32, i32) {
    %c0_i32 = arith.constant 0 : i32
    %c0_i32_0 = arith.constant 0 : i32
    %c0_i32_1 = arith.constant 0 : i32
    return %c0_i32, %c0_i32_0 : i32, i32
  }
  func.func @transform_4(%arg0: i32) -> (i32, i32) {
    %c0_i32 = arith.constant 0 : i32
    %c0_i32_0 = arith.constant 0 : i32
    %c0_i32_1 = arith.constant 0 : i32
    return %c0_i32, %c0_i32_0 : i32, i32
  }
  func.func @transform_5(%arg0: i32) -> (i32, i32) {
    %c0_i32 = arith.constant 0 : i32
    %c0_i32_0 = arith.constant 0 : i32
    %c0_i32_1 = arith.constant 0 : i32
    return %c0_i32, %c0_i32_0 : i32, i32
  }
  func.func @transform_6(%arg0: i32) -> (i32, i32, i32) {
    %c0_i32 = arith.constant 0 : i32
    %c0_i32_0 = arith.constant 0 : i32
    %c0_i32_1 = arith.constant 0 : i32
    return %arg0, %c0_i32, %c0_i32_0 : i32, i32, i32
  }
}

</mosaic_0001>

<bundles_post_ra>
// kernel: tpu_custom_call.1
= control target key start
LH: loop header
LB: loop body
LE: loop exit
PB: predicated region body
PF: predicated region fallthrough
CT: control target
= control target key end

     0   :  { %11 = vsyncpa [#allocation6], 0  ;;  %s1714_s0 = inlined_call_operand.hbm [shape: bf16[2,8,512], index: 0, kind: input, shape index: {}]   ;;  %s1715_s1 = inlined_call_operand.vmem [shape: f32[1,384], index: 1, kind: input, shape index: {}]   ;;  %s1716_s2 = inlined_call_operand.vmem [shape: bf16[8,72], index: 2, kind: input, shape index: {}]   ;;  %s1717_s3 = inlined_call_operand.vmem [shape: f32[8,1], index: 3, kind: input, shape index: {}]   ;;  %s1718_s4 = inlined_call_operand.vmem [shape: bf16[4,72], index: 4, kind: input, shape index: {}]   ;;  %s1719_s5 = inlined_call_operand.vmem [shape: f32[4,1], index: 5, kind: input, shape index: {}]   ;;  %s1720_s6 = inlined_call_operand.hbm [shape: f32[2,4,384], index: 6, kind: output, shape index: {}]  }
   0x1   :  { %13 = vsyncpa [#allocation6 + $0x1], 0 }
   0x2   :  { %14 = vsyncpa [#allocation7], 0 }
   0x3   :  { %16 = vsyncpa [#allocation7 + $0x1], 0  ;;  %s1408_s21 = smov 0   ;;  %s1410_s22 = smov 0  }
   0x4   :  { %s1412_s23 = smov 0   ;;  %s1414_s24 = smov 0  }
   0x5 LB: > { %s1429_s25 = sadd.s32 4294967295, %s1357_s24   ;;  %s1102_s26 = sadd.s32 4294967294, %s1357_s24   ;;  %s1357_s24 = sphi %s1414_s24, %s1737_s24   ;;  %s1353_s23 = sphi %s1412_s23, %s1736_s23   ;;  %s1349_s22 = sphi %s1410_s22, %s1735_s22   ;;  %s1345_s21 = sphi %s1408_s21, %s1734_s21  }
   0x6   : > { %s1433_s27 = sadd.s32 1, %s1357_s24   ;;  %s29_s28 = sadd.s32 1, %s1353_s23 }
   0x7   : > { %s26_s29 = ssub.s32 %s1357_s24, %s1433_s27  ;;  %p36_p0 = scmp.ne.s32.totalorder %s1353_s23, %s1349_s22 }
   0x8   : > { %p27_p1 = scmp.eq.s32.totalorder %s26_s29, 0  ;;  %p37_p2 = scmp.eq.s32.totalorder %s1357_s24, 0 }
   0x9   : > { %p42_p3 = scmp.ne.s32.totalorder %s1349_s22, %s1345_s21  ;;  %p43_p4 = scmp.eq.s32.totalorder %s1429_s25, 0 }
   0xa   : > { %s1445_s30 = scalar_select %p27_p1, %s1353_s23, %s29_s28  }
   0xb   : > { %p1447_p5 = por %p37_p2, %p36_p0  ;;  %p1451_p6 = por %p43_p4, %p42_p3 }
   0xc   : > { %p171_p7 = scmp.eq.s32.totalorder %s1429_s25, 1  ;;  %p177_p8 = scmp.eq.s32.totalorder %s1102_s26, 1 }
   0xd   : > { %s1724_s8 = scalar_select %p1451_p6, 1, 0 }
   0xe   : > { %p1208_p10 = scmp.lt.s32.totalorder %s1357_s24, 2  ;;  %p1458_p11 = por %p171_p7, %p36_p0 }
   0xf   : > { %p1462_p12 = por %p177_p8, %p42_p3  ;;  %s212_s11 = sand.u32 1, %s1353_s23  }
  0x10   : > { %s1725_s9 = scalar_select %p1458_p11, 1, 0 }
  0x11   : > { %s1726_s10 = scalar_select %p1462_p12, 1, 0 }
  0x12   : > { %s1151_s12 = sshll.u32 %s1357_s24, 8  ;;  %s1105_s13 = sshll.u32 %s212_s11, 4 }
  0x13   : > { %s1471_s16 = scalar_lea.hbm %s1714_s0, %s1151_s12  ;;  %s216_s17 = scalar_lea.vmem [#allocation5], %s1105_s13 }
  0x14   : > { %s224_s18 = sshll.u32 %s216_s17, 4  ;;  %p1475_p13 = pnand %p1208_p10, %p1447_p5  ;;  %s1479_s18 = int_to_ptr.vmem [resolvable:$true] %s224_s18 }
  0x15   : > { %s213_s20 = scalar_lea.sflag [#allocation6], %s212_s11  ;;  %s1265_s26 = scalar_lea.hbm %s1471_s16, 256 }
  0x16   : > { %p1266_p2 = scmp.ne.s32.totalorder %s1471_s16, %s1265_s26  ;;  %p1267_p3 = pneg %p1475_p13 }
  0x17   : > { %s1270_s7 = scalar_lea.hbm %s1714_s0, 512  ;;  %p1271_p5 = scmp.lt.s32.totalorder %s1471_s16, %s1714_s0 }
  0x18   : > { %p1268_p4 = pnand %p1267_p3, %p1266_p2  ;;  %p1272_p8 = scmp.lt.s32.totalorder %s1270_s7, %s1265_s26 }
  0x1a   : > { %p1269_p7 = pneg %p1268_p4  ;;  %p1273_p10 = por %p1272_p8, %p1271_p5 }
  0x1c   : > { %p1274_p9 = pnand %p1273_p10, %p1269_p7 }
  0x1e   : > { %1277 = shalt.err (!%p1274_p9)
}
  0x1f   : > { %s1278_s11 = scalar_lea.vmem %s1479_s18, 256  ;;  %s1359_s14 = smov [#allocation5]  }
  0x20   : > { %p1279_p0 = scmp.ne.s32.totalorder %s1479_s18, %s1278_s11  ;;  %s1283_s15 = sshll.u32 %s1359_s14, 4  ;;  %s1284_s15 = int_to_ptr.vmem [resolvable:$false] %s1283_s15 }
  0x21   : > { %s1285_s17 = scalar_lea.vmem %s1284_s15, 512  ;;  %p1286_p4 = scmp.lt.s32.totalorder %s1479_s18, %s1284_s15 }
  0x22   : > { %p1281_p1 = pnand %p1279_p0, %p1267_p3  ;;  %p1287_p12 = scmp.lt.s32.totalorder %s1285_s17, %s1278_s11 }
  0x24   : > { %p1282_p2 = pneg %p1281_p1  ;;  %p1288_p11 = por %p1287_p12, %p1286_p4 }
  0x26   : > { %p1289_p6 = pnand %p1288_p11, %p1282_p2 }
  0x28   : > { %1292 = shalt.err (!%p1289_p6)
}
  0x29   : > { %1203 = dma.hbm_to_vmem [thread:$0]  (!%p1475_p13), %s1471_s16, 256, %s1479_s18, %s213_s20  }
  0x2a   : > { %p1728_p9 = scmp.lt.s32.totalorder %s1357_s24, 3  ;;  %p1729_p7 = scmp.ge.s32.totalorder %s1357_s24, 1 }
  0x2c   : > { %p230_p0 = pnand %p1729_p7, %p1728_p9 }
  0x2d   : > { %s1506_s26 = sand.u32 (!%p230_p0), 1, %s1349_s22   ;;  %p1730_p6 = scmp.ne.s32.totalorder (!%p230_p0), %s1724_s8, 0 }
  0x2e   : > { %233 = sbr.rel (%p230_p0) target bundleno = 910 (0x38e), region = 44  ;;  %s1109_s28 = sshll.u32 (!%p230_p0), %s1506_s26, 4 }
  0x2f   : > { %s236_s29 = scalar_lea.sflag (!%p230_p0), [#allocation6], %s1506_s26  ;;  %s239_s7 = scalar_lea.vmem (!%p230_p0), [#allocation5], %s1109_s28 }
  0x33   : > { %1336 = dma.done.wait (%p1730_p6), %s236_s29, 256  }
  0x34   : > { %1338 = vsyncadd (%p1730_p6), %s236_s29, 4294967040  ;;  %v1514_v0 = vld [vmem:[%s239_s7] sm:$0xff]  ;;  %s1360_s16 = smov 90   ;;  %s1361_s18 = smov 92   ;;  %v401_v1 = vld [vmem:[%s239_s7 + $0x8] sm:$0xff]  ;;  %v1362_v2 = vmov 0.0  }
  0x35   : > { %404 = vrot.lane.b32.xlu0 %v1514_v0, %s1360_s16  ;;  %368 = vrot.lane.b32.xlu1 %v1514_v0, %s1361_s18  ;;  %s1363_s8 = smov 91   ;;  %s1364_s19 = smov 109   ;;  %v270_v3 = vld [vmem:[%s239_s7 + $0x8] sm:$0xf]  ;;  %v1368_v4 = vmov 0   ;;  %vm1370_vm0 = vmmov 0  }
  0x36   : > { %1166 = vmatprep.subr.bf16.mxu1 %v1362_v2  ;;  %s1365_s20 = smov 108   ;;  %272 = vst [vmem:[#allocation2 + $0x8] sm:$0xf] %v270_v3  ;;  %s1366_s12 = smov 126   ;;  %561 = vmatprep.mubr.bf16.mxu0 %v1368_v4  ;;  %v437_v5 = vld [vmem:[%s1717_s3] sm:$0xff]  ;;  %vm283_vm1 = vcmask 1043456  }
  0x37   : > { %s1367_s13 = smov 110   ;;  %1254 = vset.pattern.permute.xlu0 %v1368_v4  ;;  %s1369_s11 = smov 127   ;;  %1176 = vmatprep.mubr.msk.bf16.mxu1 %vm1370_vm0, %v1362_v2  ;;  %vm411_vm2 = vcmask 736256   ;;  %vm375_vm3 = vcmask 752640   ;;  %vm393_vm4 = vcmask 744448   ;;  %vm339_vm5 = vcmask 891904  }
  0x38   : > { %vm357_vm6 = vcmask 883712   ;;  %vm303_vm7 = vcmask 1031168   ;;  %vm321_vm8 = vcmask 900096   ;;  %vm285_vm9 = vcmask 1039360   ;;  %s1371_s14 = smov 19   ;;  %p1731_p12 = scmp.ne.s32.totalorder %s1725_s9, 0 }
  0x39   : > { %406 = vrot.lane.b32.xlu0 %v401_v1, %s1360_s16  ;;  %370 = vrot.lane.b32.xlu1 %v401_v1, %s1361_s18  ;;  %vm515_vm10 = vcmask 588800   ;;  %vm642_vm11 = vcmask 150528   ;;  %vm644_vm12 = vcmask 1043608   ;;  %s1372_s7 = smov [#allocation8]  }
  0x3a   : > { %643 = vst.msk [vmem:[#allocation3] sm:$0xf] %vm642_vm11, %v1368_v4  ;;  %vm660_vm11 = vcmask 154624  }
  0x3b   : > { %645 = vst.msk [vmem:[#allocation3 + $0xc] sm:$0xf] %vm644_vm12, %v1368_v4 }
  0x3d   : > { %386 = vrot.lane.b32.xlu0 %v1514_v0, %s1363_s8  ;;  %388 = vrot.lane.b32.xlu1 %v401_v1, %s1363_s8 }
  0x41   : > { %334 = vrot.lane.b32.xlu1 %v401_v1, %s1364_s19  ;;  %332 = vrot.lane.b32.xlu0 %v1514_v0, %s1364_s19 }
  0x45   : > { %352 = vrot.lane.b32.xlu1 %v401_v1, %s1365_s20  ;;  %350 = vrot.lane.b32.xlu0 %v1514_v0, %s1365_s20 }
  0x49   : > { %298 = vrot.lane.b32.xlu1 %v401_v1, %s1366_s12  ;;  %296 = vrot.lane.b32.xlu0 %v1514_v0, %s1366_s12 }
  0x4d   : > { %316 = vrot.lane.b32.xlu1 %v401_v1, %s1367_s13  ;;  %314 = vrot.lane.b32.xlu0 %v1514_v0, %s1367_s13 }
  0x51   : > { %279 = vrot.lane.b32.xlu1 %v401_v1, %s1369_s11  ;;  %277 = vrot.lane.b32.xlu0 %v1514_v0, %s1369_s11 }
  0x55   : > { %440 = vperm.xlu0 %1254, %v437_v5  }
  0xa7   : > { %v405_v6 = vpop.permute.xlu0 %404  ;;  %v369_v7 = vpop.permute.xlu1 %368 }
  0xa8   : > { %v408_v10 = vrot.slane %v405_v6, 4  ;;  %v372_v11 = vrot.slane %v369_v7, 4 }
  0xab   : > { %v407_v8 = vpop.permute.xlu0 %406  ;;  %v371_v9 = vpop.permute.xlu1 %370 }
  0xac   : > { %v409_v12 = vrot.slane %v407_v8, 4  ;;  %v373_v13 = vrot.slane %v371_v9, 4 }
  0xae   : > { %v410_v14 = vsel %vm283_vm1, %v408_v10, %v409_v12  ;;  %v413_v15 = vsel %vm411_vm2, %v407_v8, %v409_v12  ;;  %v374_v16 = vsel %vm283_vm1, %v372_v11, %v373_v13  ;;  %v377_v17 = vsel %vm375_vm3, %v371_v9, %v373_v13 }
  0xaf   : > { %v412_v18 = vsel %vm411_vm2, %v405_v6, %v410_v14  ;;  %417 = vst [vmem:[#allocation2 + $0x68] sm:$0xf] %v413_v15  ;;  %v376_v19 = vsel %vm375_vm3, %v369_v7, %v374_v16  ;;  %381 = vst [vmem:[#allocation2 + $0x50] sm:$0xf] %v377_v17  ;;  %v387_v20 = vpop.permute.xlu0 %386  ;;  %v389_v21 = vpop.permute.xlu1 %388  ;;  %v418_v17 = vld [vmem:[%s1716_s2] sm:$0xf] }
  0xb0   : > { %v390_v22 = vrot.slane %v387_v20, 4  ;;  %v391_v23 = vrot.slane %v389_v21, 4  ;;  %v1123_v24 = vcombine.high %v412_v18, %v412_v18  ;;  %v1122_v25 = vcombine.low %v412_v18, %v412_v18 }
  0xb2   : > { %v392_v26 = vsel %vm283_vm1, %v390_v22, %v391_v23  ;;  %v395_v27 = vsel %vm393_vm4, %v389_v21, %v391_v23  ;;  %1125 = vmatprep.subr.msk.bf16.mxu0 %vm283_vm1, %v1123_v24  ;;  %v521_v28 = vsel %vm283_vm1, %v1122_v25, 0  ;;  %v619_v25 = vld [vmem:[%s1715_s1] sm:$0x7] }
  0xb3   : > { %v394_v29 = vsel %vm393_vm4, %v387_v20, %v392_v26  ;;  %399 = vst [vmem:[#allocation2 + $0x5c] sm:$0xf] %v395_v27  ;;  %v335_v30 = vpop.permute.xlu1 %334  ;;  %v333_v31 = vpop.permute.xlu0 %332  ;;  %536 = vmatpush1.bf16.msra.mxu0 %v521_v28 }
  0xb4   : > { %v337_v32 = vrot.slane %v335_v30, 4  ;;  %v336_v33 = vrot.slane %v333_v31, 4  ;;  %v1120_v34 = vcombine.high %v376_v19, %v394_v29  ;;  %v1119_v35 = vcombine.low %v376_v19, %v394_v29 }
  0xb6   : > { %v341_v36 = vsel %vm339_vm5, %v335_v30, %v337_v32  ;;  %v338_v37 = vsel %vm283_vm1, %v336_v33, %v337_v32  ;;  %v1255_v38 = vld [vmem:[#allocation2 + $0x68] ss:$0 sps:$4 sm:$0xff]   ;;  %537 = vmatprep.subr.bf16.mxu0 %v1120_v34 }
  0xb7   : > { %345 = vst [vmem:[#allocation2 + $0x38] sm:$0xf] %v341_v36  ;;  %v340_v39 = vsel %vm339_vm5, %v333_v31, %v338_v37  ;;  %v353_v40 = vpop.permute.xlu1 %352  ;;  %v351_v41 = vpop.permute.xlu0 %350  ;;  %538 = vmatpush1.bf16.msra.mxu0 %v1119_v35  ;;  %v527_v44 = vsel %vm283_vm1, %v1255_v38, 0 }
  0xb8   : > { %v355_v42 = vrot.slane %v353_v40, 4  ;;  %v354_v43 = vrot.slane %v351_v41, 4  ;;  %1167 = vmatpush3.bf16.msra.mxu1 %v527_v44 }
  0xb9   : > { %1168 = vmatprep.subr.bf16.mxu1 %v1362_v2 }
  0xba   : > { %v359_v45 = vsel %vm357_vm6, %v353_v40, %v355_v42  ;;  %v356_v46 = vsel %vm283_vm1, %v354_v43, %v355_v42  ;;  %v1256_v47 = vld [vmem:[#allocation2 + $0x50] ss:$12 sps:$4 sm:$0xff]  }
  0xbb   : > { %363 = vst [vmem:[#allocation2 + $0x44] sm:$0xf] %v359_v45  ;;  %v358_v48 = vsel %vm357_vm6, %v351_v41, %v356_v46  ;;  %v299_v49 = vpop.permute.xlu1 %298  ;;  %v297_v50 = vpop.permute.xlu0 %296 }
  0xbc   : > { %v301_v51 = vrot.slane %v299_v49, 4  ;;  %v300_v52 = vrot.slane %v297_v50, 4  ;;  %v1117_v53 = vcombine.high %v340_v39, %v358_v48  ;;  %v1116_v54 = vcombine.low %v340_v39, %v358_v48  ;;  %1169 = vmatpush3.bf16.msra.mxu1 %v1256_v47 }
  0xbd   : > { %1170 = vmatprep.subr.bf16.mxu1 %v1362_v2 }
  0xbe   : > { %v305_v55 = vsel %vm303_vm7, %v299_v49, %v301_v51  ;;  %v302_v56 = vsel %vm283_vm1, %v300_v52, %v301_v51  ;;  %539 = vmatprep.subr.bf16.mxu0 %v1117_v53 }
  0xbf   : > { %309 = vst [vmem:[#allocation2 + $0x20] sm:$0xf] %v305_v55  ;;  %v304_v57 = vsel %vm303_vm7, %v297_v50, %v302_v56  ;;  %v317_v58 = vpop.permute.xlu1 %316  ;;  %v315_v59 = vpop.permute.xlu0 %314  ;;  %540 = vmatpush1.bf16.msra.mxu0 %v1116_v54 }
  0xc0   : > { %v319_v60 = vrot.slane %v317_v58, 4  ;;  %v318_v61 = vrot.slane %v315_v59, 4 }
  0xc2   : > { %v323_v62 = vsel %vm321_vm8, %v317_v58, %v319_v60  ;;  %v320_v63 = vsel %vm283_vm1, %v318_v61, %v319_v60  ;;  %v1257_v1 = vld [vmem:[#allocation2 + $0x38] ss:$12 sps:$4 sm:$0xff]  }
  0xc3   : > { %327 = vst [vmem:[#allocation2 + $0x2c] sm:$0xf] %v323_v62  ;;  %v322_v3 = vsel %vm321_vm8, %v315_v59, %v320_v63  ;;  %v280_v5 = vpop.permute.xlu1 %279  ;;  %v278_v6 = vpop.permute.xlu0 %277  ;;  %1171 = vmatpush3.bf16.msra.mxu1 %v1257_v1  ;;  %v831_v59 = vld [vmem:[%s1719_s5] sm:$0xf] }
  0xc4   : > { %v282_v7 = vrot.slane %v280_v5, 4  ;;  %v281_v8 = vrot.slane %v278_v6, 4  ;;  %v1114_v9 = vcombine.high %v304_v57, %v322_v3  ;;  %v1113_v10 = vcombine.low %v304_v57, %v322_v3  ;;  %1172 = vmatprep.subr.bf16.mxu1 %v1362_v2 }
  0xc6   : > { %v287_v11 = vsel %vm285_vm9, %v280_v5, %v282_v7  ;;  %v284_v12 = vsel %vm283_vm1, %v281_v8, %v282_v7  ;;  %541 = vmatprep.subr.bf16.mxu0 %v1114_v9 }
  0xc7   : > { %291 = vst [vmem:[#allocation2 + $0x14] sm:$0xf] %v287_v11  ;;  %v286_v13 = vsel %vm285_vm9, %v278_v6, %v284_v12  ;;  %542 = vmatpush1.bf16.msra.mxu0 %v1113_v10 }
  0xc8   : > { %v1111_v14 = vcombine.high %v1514_v0, %v286_v13  ;;  %v1110_v15 = vcombine.low %v1514_v0, %v286_v13  ;;  %v621_v0 = vlaneseq }
  0xca   : > { %v1258_v16 = vld [vmem:[#allocation2 + $0x20] ss:$12 sps:$4 sm:$0xff]   ;;  %543 = vmatprep.subr.bf16.mxu0 %v1111_v14  ;;  %v622_v19 = vshrl.u32 %v621_v0, 7 }
  0xcb   : > { %544 = vmatpush1.bf16.msra.mxu0 %v1110_v15  ;;  %1173 = vmatpush3.bf16.msra.mxu1 %v1258_v16 }
  0xcc   : > { %1174 = vmatprep.subr.bf16.mxu1 %v1362_v2  ;;  %v623_v22 = vsub.s32 0, %v622_v19  ;;  %v627_v23 = vsub.s32 1, %v622_v19  ;;  %v631_v29 = vsub.s32 2, %v622_v19 }
  0xce   : > { %v1259_v18 = vld [vmem:[#allocation2 + $0x8] ss:$12 sps:$4 sm:$0xff]   ;;  %1126 = vmatmul.mubr.msk.bf16.vlgmr.msra.gmra.mxu0 %vm515_vm10, %v418_v17  ;;  %v624_v31 = vrot.slane %v619_v25, %v623_v22  ;;  %v628_v32 = vrot.slane %v619_v25, %v627_v23  ;;  %v632_v39 = vrot.slane %v619_v25, %v631_v29 }
  0xcf   : > { %953 = vmatprep.mubr.bf16.mxu0 %v1368_v4  ;;  %1175 = vmatpush3.bf16.msra.mxu1 %v1259_v18 }
  0xd0   : > { %1180 = vmatprep.subr.bf16.mxu1 %v1362_v2  ;;  %v441_v20 = vpop.permute.xlu0 %440 }
  0xd2   : > { %1177 = vmatmul.mubr.msk.bf16.vlgmr.msra.gmra.mxu1 %vm515_vm10, %v418_v17 }
  0xd3   : > { %1190 = vmatprep.mubr.msk.bf16.mxu1 %vm1370_vm0, %v1362_v2  ;;  %vm666_vm0 = vcmask 1047556  }
 0x18e   : > { %v563_v21 = vpop.f32.mrf.mxu0 }
 0x18f   : > { %v564_v24 = vadd.f32 %v563_v21, %v441_v20 }
 0x190   : > { %v565_v26 = vpop.f32.mrf.mxu0 }
 0x191   : > { %vm610_vm13 = vcmp.gt.f32.partialorder %v564_v24, 0.0  ;;  %v613_v27 = vmul.f32 0.1, %v564_v24  ;;  %v566_v28 = vadd.f32 %v565_v26, %v441_v20 }
 0x192   : > { %v567_v30 = vpop.f32.mrf.mxu0  ;;  %v604_v33 = vpop.f32.mrf.mxu1 }
 0x193   : > { %v616_v4 = vsel %vm610_vm13, %v564_v24, %v613_v27  ;;  %vm611_vm14 = vcmp.gt.f32.partialorder %v566_v28, 0.0  ;;  %v614_v34 = vmul.f32 0.1, %v566_v28  ;;  %v605_v35 = vadd.f32 %v604_v33, %v441_v20  ;;  %vm667_vm13 = vmor %vm666_vm0, %vm644_vm12 }
 0x194   : > { %v568_v36 = vpop.f32.mrf.mxu0  ;;  %v1178_v38 = vpop.f32.mrf.mxu1  ;;  %v636_v41 = vmul.f32 %v624_v31, %v616_v4 }
 0x195   : > { %v617_v37 = vsel %vm611_vm14, %v566_v28, %v614_v34  ;;  %vm612_vm15 = vcmp.gt.f32.partialorder %v605_v35, 0.0  ;;  %v615_v40 = vmul.f32 0.1, %v605_v35  ;;  %vm669_vm14 = vcmask 154628  }
 0x196   : > { %v637_v42 = vmul.f32 %v628_v32, %v617_v37  ;;  %v607_v43 = vpop.f32.mrf.mxu1 }
 0x197   : > { %v618_v44 = vsel %vm612_vm15, %v605_v35, %v615_v40  ;;  %vm670_vm15 = vmor %vm669_vm14, %vm283_vm1 }
 0x198   : > { %v1152_v45 = vpack.c.bf16 %v637_v42, %v636_v41  ;;  %v1179_v46 = vpop.f32.mrf.mxu1  ;;  %v638_v47 = vmul.f32 %v632_v39, %v618_v44 }
 0x19a   : > { %654 = vrot.lane.b32.xlu1 %v1152_v45, %s1371_s14  ;;  %v1153_v48 = vpack.c.bf16 %v638_v47, %v638_v47 }
 0x19e   : > { %656 = vrot.lane.b32.xlu1 %v1153_v48, %s1371_s14  ;;  %s1297_s14 = sshll.u32 %s1372_s7, 4  ;;  %s1298_s14 = int_to_ptr.vmem [resolvable:$false] %s1297_s14 }
 0x20c   : > { %v655_v49 = vpop.permute.xlu1 %654 }
 0x20d   : > { %v658_v50 = vrot.slane %v655_v49, 4 }
 0x20f   : > { %v661_v51 = vsel %vm660_vm11, %v658_v50, %v655_v49 }
 0x210   : > { %668 = vst.msk [vmem:[#allocation3] sm:$0xff] %vm667_vm13, %v661_v51  ;;  %v657_v52 = vpop.permute.xlu1 %656 }
 0x211   : > { %v659_v53 = vrot.slane %v657_v52, 4 }
 0x213   : > { %v662_v54 = vsel %vm283_vm1, %v658_v50, %v659_v53 }
 0x214   : > { %v663_v55 = vsel %vm660_vm11, %v662_v54, %v657_v52 }
 0x215   : > { %671 = vst.msk [vmem:[#allocation3 + $0x8] sm:$0xff] %vm670_vm15, %v663_v55 }
 0x217   : > { %v1599_v56 = vld [vmem:[#allocation3] sm:$0xff] }
 0x218   : > { %799 = vrot.lane.b32.xlu0 %v1599_v56, %s1360_s16 }
 0x21c   : > { %v673_v57 = vld [vmem:[#allocation3 + $0x8] sm:$0xf]  ;;  %765 = vrot.lane.b32.xlu0 %v1599_v56, %s1361_s18 }
 0x21d   : > { %v796_v58 = vld [vmem:[#allocation3 + $0x8] sm:$0xff]  ;;  %675 = vst [vmem:[#allocation4 + $0x8] sm:$0xf] %v673_v57 }
 0x21e   : > { %801 = vrot.lane.b32.xlu1 %v796_v58, %s1360_s16  ;;  %s1299_s16 = scalar_lea.vmem %s1298_s14, 384 }
 0x220   : > { %782 = vrot.lane.b32.xlu0 %v1599_v56, %s1363_s8 }
 0x222   : > { %767 = vrot.lane.b32.xlu1 %v796_v58, %s1361_s18 }
 0x224   : > { %731 = vrot.lane.b32.xlu0 %v1599_v56, %s1364_s19 }
 0x226   : > { %784 = vrot.lane.b32.xlu1 %v796_v58, %s1363_s8 }
 0x228   : > { %748 = vrot.lane.b32.xlu0 %v1599_v56, %s1365_s20 }
 0x22a   : > { %733 = vrot.lane.b32.xlu1 %v796_v58, %s1364_s19 }
 0x22c   : > { %697 = vrot.lane.b32.xlu0 %v1599_v56, %s1366_s12 }
 0x22e   : > { %750 = vrot.lane.b32.xlu1 %v796_v58, %s1365_s20  ;;  %s1194_s20 = smul.u32 12, %s1506_s26 }
 0x230   : > { %714 = vrot.lane.b32.xlu0 %v1599_v56, %s1367_s13 }
 0x232   : > { %699 = vrot.lane.b32.xlu1 %v796_v58, %s1366_s12  ;;  %s1195_s12 = smul.u32 192, %s1429_s25  ;;  %s1018_s25 = scalar_lea.sflag [#allocation7], %s1506_s26 }
 0x234   : > { %680 = vrot.lane.b32.xlu0 %v1599_v56, %s1369_s11  ;;  %s1671_s28 = scalar_lea.hbm %s1720_s6, %s1195_s12 }
 0x236   : > { %716 = vrot.lane.b32.xlu1 %v796_v58, %s1367_s13  ;;  %s267_s13 = scalar_lea.vmem [#allocation8], %s1194_s20 }
 0x238   : > { %834 = vperm.xlu0 %1254, %v831_v59  }
 0x23a   : > { %682 = vrot.lane.b32.xlu1 %v796_v58, %s1369_s11  ;;  %s1032_s11 = sshll.u32 %s267_s13, 4  ;;  %s1673_s11 = int_to_ptr.vmem [resolvable:$true] %s1032_s11 }
 0x23b   : > { %s1293_s29 = scalar_lea.vmem %s1673_s11, 192  ;;  %p1300_p3 = scmp.lt.s32.totalorder %s1673_s11, %s1298_s14 }
 0x23c   : > { %p1294_p11 = scmp.ne.s32.totalorder %s1673_s11, %s1293_s29  ;;  %p1301_p5 = scmp.lt.s32.totalorder %s1299_s16, %s1293_s29 }
 0x23e   : > { %p1295_p13 = pnand %p1294_p11, %p1731_p12  ;;  %p1302_p8 = por %p1301_p5, %p1300_p3 }
 0x240   : > { %p1296_p1 = pneg %p1295_p13 }
 0x242   : > { %p1303_p10 = pnand %p1302_p8, %p1296_p1 }
 0x28a   : > { %v800_v60 = vpop.permute.xlu0 %799 }
 0x28b   : > { %v803_v63 = vrot.slane %v800_v60, 4 }
 0x28e   : > { %v766_v61 = vpop.permute.xlu0 %765 }
 0x28f   : > { %v769_v9 = vrot.slane %v766_v61, 4 }
 0x290   : > { %v802_v62 = vpop.permute.xlu1 %801 }
 0x291   : > { %v804_v1 = vrot.slane %v802_v62, 4 }
 0x292   : > { %v783_v6 = vpop.permute.xlu0 %782 }
 0x293   : > { %v805_v3 = vsel %vm283_vm1, %v803_v63, %v804_v1  ;;  %v807_v5 = vsel %vm411_vm2, %v802_v62, %v804_v1  ;;  %v786_v0 = vrot.slane %v783_v6, 4 }
 0x294   : > { %v806_v7 = vsel %vm411_vm2, %v800_v60, %v805_v3  ;;  %811 = vst [vmem:[#allocation4 + $0x68] sm:$0xf] %v807_v5  ;;  %v768_v8 = vpop.permute.xlu1 %767 }
 0x295   : > { %v770_v10 = vrot.slane %v768_v8, 4  ;;  %v1143_v11 = vcombine.high %v806_v7, %v806_v7  ;;  %v1142_v12 = vcombine.low %v806_v7, %v806_v7 }
 0x296   : > { %v732_v15 = vpop.permute.xlu0 %731 }
 0x297   : > { %v771_v13 = vsel %vm283_vm1, %v769_v9, %v770_v10  ;;  %v773_v14 = vsel %vm375_vm3, %v768_v8, %v770_v10  ;;  %1145 = vmatprep.subr.msk.bf16.mxu0 %vm283_vm1, %v1143_v11  ;;  %v913_v16 = vsel %vm283_vm1, %v1142_v12, 0  ;;  %v735_v24 = vrot.slane %v732_v15, 4  ;;  %v812_v9 = vld [vmem:[%s1718_s4] sm:$0x3] }
 0x298   : > { %v772_v17 = vsel %vm375_vm3, %v766_v61, %v771_v13  ;;  %777 = vst [vmem:[#allocation4 + $0x50] sm:$0xf] %v773_v14  ;;  %v785_v18 = vpop.permute.xlu1 %784  ;;  %928 = vmatpush1.bf16.msra.mxu0 %v913_v16 }
 0x299   : > { %v787_v19 = vrot.slane %v785_v18, 4 }
 0x29a   : > { %v749_v22 = vpop.permute.xlu0 %748 }
 0x29b   : > { %v788_v20 = vsel %vm283_vm1, %v786_v0, %v787_v19  ;;  %v790_v21 = vsel %vm393_vm4, %v785_v18, %v787_v19  ;;  %v1260_v23 = vld [vmem:[#allocation4 + $0x68] ss:$0 sps:$4 sm:$0xff]   ;;  %v752_v35 = vrot.slane %v749_v22, 4 }
 0x29c   : > { %v789_v25 = vsel %vm393_vm4, %v783_v6, %v788_v20  ;;  %794 = vst [vmem:[#allocation4 + $0x5c] sm:$0xf] %v790_v21  ;;  %v734_v26 = vpop.permute.xlu1 %733  ;;  %v919_v28 = vsel %vm283_vm1, %v1260_v23, 0 }
 0x29d   : > { %v736_v27 = vrot.slane %v734_v26, 4  ;;  %v1139_v29 = vcombine.low %v772_v17, %v789_v25  ;;  %v1140_v30 = vcombine.high %v772_v17, %v789_v25  ;;  %1181 = vmatpush3.bf16.msra.mxu1 %v919_v28 }
 0x29e   : > { %v698_v4 = vpop.permute.xlu0 %697  ;;  %1182 = vmatprep.subr.bf16.mxu1 %v1362_v2 }
 0x29f   : > { %v737_v31 = vsel %vm283_vm1, %v735_v24, %v736_v27  ;;  %v739_v32 = vsel %vm339_vm5, %v734_v26, %v736_v27  ;;  %929 = vmatprep.subr.bf16.mxu0 %v1140_v30  ;;  %v701_v43 = vrot.slane %v698_v4, 4 }
 0x2a0   : > { %v738_v33 = vsel %vm339_vm5, %v732_v15, %v737_v31  ;;  %743 = vst [vmem:[#allocation4 + $0x38] sm:$0xf] %v739_v32  ;;  %v751_v34 = vpop.permute.xlu1 %750  ;;  %930 = vmatpush1.bf16.msra.mxu0 %v1139_v29 }
 0x2a1   : > { %v753_v36 = vrot.slane %v751_v34, 4 }
 0x2a2   : > { %v715_v41 = vpop.permute.xlu0 %714 }
 0x2a3   : > { %v754_v37 = vsel %vm283_vm1, %v752_v35, %v753_v36  ;;  %v756_v38 = vsel %vm357_vm6, %v751_v34, %v753_v36  ;;  %v1261_v39 = vld [vmem:[#allocation4 + $0x50] ss:$12 sps:$4 sm:$0xff]   ;;  %v718_v51 = vrot.slane %v715_v41, 4 }
 0x2a4   : > { %v755_v40 = vsel %vm357_vm6, %v749_v22, %v754_v37  ;;  %760 = vst [vmem:[#allocation4 + $0x44] sm:$0xf] %v756_v38  ;;  %v700_v42 = vpop.permute.xlu1 %699  ;;  %1183 = vmatpush3.bf16.msra.mxu1 %v1261_v39 }
 0x2a5   : > { %v702_v44 = vrot.slane %v700_v42, 4  ;;  %v1136_v45 = vcombine.low %v738_v33, %v755_v40  ;;  %v1137_v46 = vcombine.high %v738_v33, %v755_v40  ;;  %1184 = vmatprep.subr.bf16.mxu1 %v1362_v2 }
 0x2a6   : > { %v681_v53 = vpop.permute.xlu0 %680 }
 0x2a7   : > { %v703_v47 = vsel %vm283_vm1, %v701_v43, %v702_v44  ;;  %v705_v48 = vsel %vm303_vm7, %v700_v42, %v702_v44  ;;  %931 = vmatprep.subr.bf16.mxu0 %v1137_v46  ;;  %v684_v60 = vrot.slane %v681_v53, 4 }
 0x2a8   : > { %v704_v49 = vsel %vm303_vm7, %v698_v4, %v703_v47  ;;  %709 = vst [vmem:[#allocation4 + $0x20] sm:$0xf] %v705_v48  ;;  %v717_v50 = vpop.permute.xlu1 %716  ;;  %932 = vmatpush1.bf16.msra.mxu0 %v1136_v45 }
 0x2a9   : > { %v719_v52 = vrot.slane %v717_v50, 4 }
 0x2ab   : > { %v720_v54 = vsel %vm283_vm1, %v718_v51, %v719_v52  ;;  %v722_v55 = vsel %vm321_vm8, %v717_v50, %v719_v52  ;;  %v1262_v57 = vld [vmem:[#allocation4 + $0x38] ss:$12 sps:$4 sm:$0xff]  }
 0x2ac   : > { %v721_v58 = vsel %vm321_vm8, %v715_v41, %v720_v54  ;;  %726 = vst [vmem:[#allocation4 + $0x2c] sm:$0xf] %v722_v55  ;;  %v683_v59 = vpop.permute.xlu1 %682  ;;  %1185 = vmatpush3.bf16.msra.mxu1 %v1262_v57 }
 0x2ad   : > { %v685_v61 = vrot.slane %v683_v59, 4  ;;  %v1133_v62 = vcombine.low %v704_v49, %v721_v58  ;;  %v1134_v63 = vcombine.high %v704_v49, %v721_v58  ;;  %1186 = vmatprep.subr.bf16.mxu1 %v1362_v2 }
 0x2af   : > { %v686_v1 = vsel %vm283_vm1, %v684_v60, %v685_v61  ;;  %v688_v3 = vsel %vm285_vm9, %v683_v59, %v685_v61  ;;  %933 = vmatprep.subr.bf16.mxu0 %v1134_v63 }
 0x2b0   : > { %v687_v5 = vsel %vm285_vm9, %v681_v53, %v686_v1  ;;  %692 = vst [vmem:[#allocation4 + $0x14] sm:$0xf] %v688_v3  ;;  %934 = vmatpush1.bf16.msra.mxu0 %v1133_v62 }
 0x2b1   : > { %v1130_v6 = vcombine.low %v1599_v56, %v687_v5  ;;  %v1131_v7 = vcombine.high %v1599_v56, %v687_v5 }
 0x2b3   : > { %v1263_v8 = vld [vmem:[#allocation4 + $0x20] ss:$12 sps:$4 sm:$0xff]   ;;  %935 = vmatprep.subr.bf16.mxu0 %v1131_v7  ;;  %v835_v11 = vpop.permute.xlu0 %834 }
 0x2b4   : > { %936 = vmatpush1.bf16.msra.mxu0 %v1130_v6  ;;  %1187 = vmatpush3.bf16.msra.mxu1 %v1263_v8 }
 0x2b5   : > { %1188 = vmatprep.subr.bf16.mxu1 %v1362_v2 }
 0x2b7   : > { %v1264_v10 = vld [vmem:[#allocation4 + $0x8] ss:$12 sps:$4 sm:$0xff]   ;;  %1146 = vmatmul.mubr.msk.bf16.vlgmr.msra.gmra.mxu0 %vm515_vm10, %v812_v9 }
 0x2b8   : > { %1189 = vmatpush3.bf16.msra.mxu1 %v1264_v10 }
 0x2bb   : > { %1191 = vmatmul.mubr.msk.bf16.vlgmr.msra.gmra.mxu1 %vm515_vm10, %v812_v9 }
 0x377   : > { %v955_v56 = vpop.f32.mrf.mxu0 }
 0x378   : > { %v956_v12 = vadd.f32 %v955_v56, %v835_v11 }
 0x379   : > { %v957_v13 = vpop.f32.mrf.mxu0 }
 0x37a   : > { %v1005_v14 = vmul.f32 0.1, %v956_v12  ;;  %v958_v15 = vadd.f32 %v957_v13, %v835_v11  ;;  %vm1002_vm1 = vcmp.gt.f32.partialorder %v956_v12, 0.0 }
 0x37b   : > { %v959_v16 = vpop.f32.mrf.mxu0  ;;  %v996_v17 = vpop.f32.mrf.mxu1 }
 0x37c   : > { %vm1003_vm2 = vcmp.gt.f32.partialorder %v958_v15, 0.0  ;;  %v1006_v18 = vmul.f32 0.1, %v958_v15  ;;  %v997_v2 = vadd.f32 %v996_v17, %v835_v11  ;;  %v1008_v19 = vsel %vm1002_vm1, %v956_v12, %v1005_v14 }
 0x37d   : > { %v960_v0 = vpop.f32.mrf.mxu0  ;;  %v1192_v20 = vpop.f32.mrf.mxu1 }
 0x37e   : > { %v1009_v21 = vsel %vm1003_vm2, %v958_v15, %v1006_v18  ;;  %vm1004_vm3 = vcmp.gt.f32.partialorder %v997_v2, 0.0  ;;  %v1007_v22 = vmul.f32 0.1, %v997_v2 }
 0x37f   : > { %v1013_v23 = vcombine.low %v1008_v19, %v1009_v21  ;;  %v999_v24 = vpop.f32.mrf.mxu1 }
 0x380   : > { %v1010_v25 = vsel %vm1004_vm3, %v997_v2, %v1007_v22 }
 0x381   : > { %1015 = vst [vmem:[%s267_s13] sm:$0xff] %v1013_v23  ;;  %1016 = vst [vmem:[%s267_s13 + $0x8] sm:$0xf] %v1010_v25  ;;  %v1193_v26 = vpop.f32.mrf.mxu1 }
 0x382   : > { %1306 = shalt.err (!%p1303_p10)
}
 0x383   : > { %s1307_s18 = scalar_lea.hbm %s1671_s28, 192  ;;  %s1311_s19 = scalar_lea.hbm %s1720_s6, 384 }
 0x384   : > { %p1308_p2 = scmp.ne.s32.totalorder %s1671_s28, %s1307_s18  ;;  %p1312_p7 = scmp.lt.s32.totalorder %s1671_s28, %s1720_s6 }
 0x385   : > { %p1313_p0 = scmp.lt.s32.totalorder %s1311_s19, %s1307_s18 }
 0x386   : > { %p1309_p4 = pnand %p1308_p2, %p1731_p12 }
 0x387   : > { %p1314_p6 = por %p1313_p0, %p1312_p7 }
 0x388   : > { %p1310_p9 = pneg %p1309_p4 }
 0x38a   : > { %p1315_p11 = pnand %p1314_p6, %p1310_p9 }
 0x38c   : > { %1318 = shalt.err (!%p1315_p11)
}
 0x38d   : > { %1198 = dma.vmem_to_hbm [thread:$0]  (%p1731_p12), %s1673_s11, 192, %s1671_s28, %s1018_s25  }
 0x38e PF: > { %s1044_s13 = sand.u32 1, %s1345_s21   ;;  %p1732_p13 = scmp.ne.s32.totalorder %s1726_s10, 0 }
 0x38f   : > { %p1733_p1 = scmp.ge.s32.totalorder %s1357_s24, 2  ;;  %s1045_s15 = scalar_lea.sflag [#allocation7], %s1044_s13 }
 0x391   : > { %p1205_p3 = pnand %p1733_p1, %p1732_p13 }
 0x393   : > { %p1206_p5 = pneg %p1205_p3 }
 0x395   : > { %1340 = dma.done.wait (%p1206_p5), %s1045_s15, 192  }
 0x396   : > { %1342 = vsyncadd (%p1206_p5), %s1045_s15, 4294967104  ;;  %p19_p8 = scmp.ge.s32.totalorder %s1433_s27, 4   ;;  %s1734_s21 = smov %s1349_s22 }
 0x397   : > { %s1735_s22 = smov %s1353_s23  ;;  %s1736_s23 = smov %s1445_s30 }
 0x398   : > { %s1737_s24 = smov %s1433_s27  ;;  %21 = sbr.rel (!%p19_p8) target bundleno = 5 (0x5), region = 89 }
 0x39d   :  { %1050 = vsyncpa [#allocation6], 1 }
 0x39e   :  { %1052 = vsyncpa [#allocation6 + $0x1], 1 }
 0x39f   :  { %1053 = vsyncpa [#allocation7], 1 }
 0x3a0   :  { %1055 = vsyncpa [#allocation7 + $0x1], 1 }

</bundles_post_ra>
